<compile_context>
chip_gen: v5e
topology: v5e:2x2
jax: 0.10.0
libtpu: 0.0.40
codegen_flags: <defaults>
</compile_context>

<pallas_src>
import jax
import jax.numpy as jnp
from jax import lax
from jax.experimental import pallas as pl
from jax.experimental.pallas import tpu as pltpu


def _round_up(x: int, m: int) -> int:
    return (x + m - 1) // m * m


def _linear_kernel_fullk(x_ref, w_ref, b_ref, o_ref):
    # Full-K, single-step path: y_block = x_block @ Wt_block + bias_block.
    o_ref[...] = (
        jnp.dot(x_ref[...], w_ref[...], preferred_element_type=jnp.float32)
        + b_ref[...]
    ).astype(o_ref.dtype)


def _linear_kernel_ksplit(x_ref, w_ref, b_ref, o_ref):
    # K-split path: accumulate directly into the (f32) output block; K is the
    # innermost "arbitrary" grid axis so the same output block is revisited.
    k = pl.program_id(2)

    @pl.when(k == 0)
    def _init():
        o_ref[...] = jnp.zeros_like(o_ref)

    o_ref[...] += jnp.dot(x_ref[...], w_ref[...], preferred_element_type=jnp.float32)

    @pl.when(k == pl.num_programs(2) - 1)
    def _bias():
        o_ref[...] += b_ref[...]


def linear_forward(x, weight, bias, *, tile_b=128, tile_n=256, tile_k=512,
                   weight_resident_bytes=4 << 20):
    """y = x @ weight.T + bias, matching nn.Linear(n_inputs, n_outputs).

    x:      (B, n_in)       float32
    weight: (n_out, n_in)   float32  (PyTorch convention)
    bias:   (n_out,)        float32
    """
    B, n_in = x.shape
    n_out = weight.shape[0]
    out_dtype = x.dtype

    b_pad = _round_up(B, 8)
    k_pad = _round_up(n_in, 128)
    n_pad = _round_up(n_out, 128)

    # One-time host-side transpose (amortized over every batch tile / call):
    # kernel contracts ((1,),(0,)) -> no in-kernel XLU transpose of the weight tile.
    wt = weight.T  # (n_in, n_out)

    weight_bytes = k_pad * n_pad * 4  # padded f32 footprint

    if weight_bytes <= weight_resident_bytes:
        # ---- Fast path: K collapsed, whole weight VMEM-resident. ----
        tb = min(tile_b, b_pad)
        b_pad = _round_up(b_pad, tb)
        tk, tn = k_pad, n_pad
        grid = (n_pad // tn, b_pad // tb)  # (j outer, i inner): W block constant over i
        in_specs = [
            pl.BlockSpec((tb, tk), lambda j, i: (i, 0)),   # x tile
            pl.BlockSpec((tk, tn), lambda j, i: (0, j)),   # weight.T block (resident)
            pl.BlockSpec((1, tn), lambda j, i: (0, j)),    # bias tile
        ]
        out_spec = pl.BlockSpec((tb, tn), lambda j, i: (i, j))
        kernel = _linear_kernel_fullk
        dims = ("parallel", "parallel")
    else:
        # ---- Fallback path: split K, accumulate into the f32 output block. ----
        tb = min(tile_b, b_pad)
        tn = min(tile_n, n_pad)
        tk = min(tile_k, k_pad)
        b_pad = _round_up(b_pad, tb)
        n_pad = _round_up(n_pad, tn)
        k_pad = _round_up(k_pad, tk)
        grid = (b_pad // tb, n_pad // tn, k_pad // tk)
        in_specs = [
            pl.BlockSpec((tb, tk), lambda i, j, k: (i, k)),   # x tile
            pl.BlockSpec((tk, tn), lambda i, j, k: (k, j)),   # weight.T tile
            pl.BlockSpec((1, tn), lambda i, j, k: (0, j)),    # bias tile
        ]
        out_spec = pl.BlockSpec((tb, tn), lambda i, j, k: (i, j))
        kernel = _linear_kernel_ksplit
        dims = ("parallel", "parallel", "arbitrary")

    # Pad operands only when needed (aligned shapes skip the extra HBM pass).
    xp = x if (b_pad, k_pad) == x.shape else jnp.pad(
        x, ((0, b_pad - B), (0, k_pad - n_in)))
    wp = wt if (k_pad, n_pad) == wt.shape else jnp.pad(
        wt, ((0, k_pad - n_in), (0, n_pad - n_out)))
    bp = bias.reshape(1, n_out)
    if n_pad != n_out:
        bp = jnp.pad(bp, ((0, 0), (0, n_pad - n_out)))

    # Double-buffered x / w / out tiles + bias, with headroom; capped at 36 MiB so the
    # same tiling is safe on v7x's 64 MiB VMEM (v5e/v6e have 128 MiB).
    vmem_bytes = 4 * (2 * tb * tk + 2 * tk * tn + 2 * tb * tn + 2 * tn)
    vmem_bytes = min(max(vmem_bytes + (1 << 20), 4 << 20), 36 << 20)

    out = pl.pallas_call(
        kernel,
        out_shape=jax.ShapeDtypeStruct((b_pad, n_pad), out_dtype),
        grid_spec=pltpu.PrefetchScalarGridSpec(
            num_scalar_prefetch=0,
            grid=grid,
            in_specs=in_specs,
            out_specs=out_spec,
        ),
        compiler_params=pltpu.CompilerParams(
            dimension_semantics=dims,
            vmem_limit_bytes=vmem_bytes,
        ),
    )(xp, wp, bp)

    if (b_pad, n_pad) != (B, n_out):
        out = out[:B, :n_out]
    return out


if __name__ == "__main__":
    # Small shapes implied by the module: batch=8, n_inputs=32, n_outputs=16.
    B, n_inputs, n_outputs = 8, 32, 16

    key = jax.random.PRNGKey(0)
    kx, kw, kb = jax.random.split(key, 3)

    # Deterministic init mimicking PyTorch nn.Linear default: U(-1/sqrt(fan_in), ...).
    bound = 1.0 / (n_inputs ** 0.5)
    weight = jax.random.uniform(kw, (n_outputs, n_inputs), jnp.float32, -bound, bound)
    bias = jax.random.uniform(kb, (n_outputs,), jnp.float32, -bound, bound)
    x = jax.random.normal(kx, (B, n_inputs), jnp.float32)

    y = linear_forward(x, weight, bias)
    jax.block_until_ready(y)

    y_ref = x @ weight.T + bias
    assert y.shape == (B, n_outputs)
    assert jnp.allclose(y, y_ref, atol=1e-5, rtol=1e-5)

    # Larger shapes: exercises the weight-resident path with >=4 parallel batch tiles.
    B2, n_in2, n_out2 = 512, 1024, 256
    key2 = jax.random.PRNGKey(1)
    kx2, kw2, kb2 = jax.random.split(key2, 3)
    bound2 = 1.0 / (n_in2 ** 0.5)
    w2 = jax.random.uniform(kw2, (n_out2, n_in2), jnp.float32, -bound2, bound2)
    b2 = jax.random.uniform(kb2, (n_out2,), jnp.float32, -bound2, bound2)
    x2 = jax.random.normal(kx2, (B2, n_in2), jnp.float32)

    y2 = linear_forward(x2, w2, b2)
    jax.block_until_ready(y2)
    y2_ref = lax.dot_general(x2, w2, (((1,), (1,)), ((), ())),
                             precision=lax.Precision.HIGHEST) + b2
    assert y2.shape == (B2, n_out2)
    assert jnp.allclose(y2, y2_ref, atol=2e-3, rtol=2e-3)

    # Exercise the K-split fallback path on the same data (force tiny residency cap).
    y3 = linear_forward(x2, w2, b2, weight_resident_bytes=0)
    jax.block_until_ready(y3)
    assert jnp.allclose(y3, y2_ref, atol=2e-3, rtol=2e-3)

    print("KERNEL_OK")
</pallas_src>

<mosaic_0001>
module attributes {stable_mosaic.version = 11 : i64} {
  func.func @_linear_kernel_fullk(%arg0: i32, %arg1: i32, %arg2: memref<8x128xf32, #tpu.memory_space<vmem>>, %arg3: memref<128x128xf32, #tpu.memory_space<vmem>>, %arg4: memref<1x128xf32, #tpu.memory_space<vmem>>, %arg5: memref<8x128xf32, #tpu.memory_space<vmem>>) attributes {dimension_semantics = [#tpu.dimension_semantics<parallel>, #tpu.dimension_semantics<parallel>], iteration_bounds = array<i64: 1, 1>, scalar_prefetch = 0 : i64, scratch_operands = 0 : i64, tpu.core_type = #tpu.core_type<tc>, window_params = [{transform_indices = @transform_0, window_bounds = array<i64: 8, 128>}, {transform_indices = @transform_1, window_bounds = array<i64: 128, 128>}, {transform_indices = @transform_2, window_bounds = array<i64: 1, 128>}, {transform_indices = @transform_3, window_bounds = array<i64: 8, 128>}]} {
    %c0 = arith.constant 0 : index
    %c0_0 = arith.constant 0 : index
    %0 = vector.load %arg2[%c0, %c0_0] : memref<8x128xf32, #tpu.memory_space<vmem>>, vector<8x128xf32>
    %c0_1 = arith.constant 0 : index
    %c0_2 = arith.constant 0 : index
    %1 = vector.load %arg3[%c0_1, %c0_2] : memref<128x128xf32, #tpu.memory_space<vmem>>, vector<128x128xf32>
    %cst = arith.constant dense<0.000000e+00> : vector<8x128xf32>
    %2 = tpu.matmul %0, %1, %cst {dimension_numbers = #tpu.dot_dimension_numbers<[1], [0], [0], [1], [0, 0, 1, 1], [], []>} : vector<8x128xf32>, vector<128x128xf32>, vector<8x128xf32> -> vector<8x128xf32>
    %c0_3 = arith.constant 0 : index
    %c0_4 = arith.constant 0 : index
    %3 = vector.load %arg4[%c0_3, %c0_4] : memref<1x128xf32, #tpu.memory_space<vmem>>, vector<1x128xf32>
    %4 = vector.broadcast %3 : vector<1x128xf32> to vector<8x128xf32>
    %5 = arith.addf %2, %4 : vector<8x128xf32>
    %c0_5 = arith.constant 0 : index
    %c0_6 = arith.constant 0 : index
    %6 = vector.load %arg5[%c0_5, %c0_6] : memref<8x128xf32, #tpu.memory_space<vmem>>, vector<8x128xf32>
    tpu.vector_store %arg5[%c0_5, %c0_6], %5 {strides = array<i32>} : memref<8x128xf32, #tpu.memory_space<vmem>>, vector<8x128xf32>,
    return
  }
  func.func @transform_0(%arg0: i32, %arg1: i32) -> (i32, i32) {
    %c0_i32 = arith.constant 0 : i32
    %c0_i32_0 = arith.constant 0 : i32
    return %arg1, %c0_i32 : i32, i32
  }
  func.func @transform_1(%arg0: i32, %arg1: i32) -> (i32, i32) {
    %c0_i32 = arith.constant 0 : i32
    %c0_i32_0 = arith.constant 0 : i32
    return %c0_i32, %arg0 : i32, i32
  }
  func.func @transform_2(%arg0: i32, %arg1: i32) -> (i32, i32) {
    %c0_i32 = arith.constant 0 : i32
    %c0_i32_0 = arith.constant 0 : i32
    return %c0_i32, %arg0 : i32, i32
  }
  func.func @transform_3(%arg0: i32, %arg1: i32) -> (i32, i32) {
    %c0_i32 = arith.constant 0 : i32
    return %arg1, %arg0 : i32, i32
  }
}

</mosaic_0001>

<bundles_post_ra>
// kernel: tpu_custom_call.1
= control target key start
LH: loop header
LB: loop body
LE: loop exit
PB: predicated region body
PF: predicated region fallthrough
CT: control target
= control target key end

     0   :  { %8 = vsyncpa [#allocation3], 0  ;;  %s226_s0 = inlined_call_operand.hbm [shape: f32[8,128], index: 0, kind: input, shape index: {}]   ;;  %s227_s1 = inlined_call_operand.hbm [shape: f32[128,128], index: 1, kind: input, shape index: {}]   ;;  %s228_s2 = inlined_call_operand.vmem [shape: f32[1,128], index: 2, kind: input, shape index: {}]   ;;  %s229_s3 = inlined_call_operand.hbm [shape: f32[8,128], index: 3, kind: output, shape index: {}]  }
   0x1   :  { %9 = vsyncpa [#allocation6], 0 }
   0x2   :  { %10 = vsyncpa [#allocation4], 0  ;;  %s16_s14 = sshll.u32 %s226_s0, 4  ;;  %s189_s15 = smov [#allocation2]   ;;  %s17_s14 = int_to_ptr.hbm [resolvable:$true] %s16_s14 }
   0x3   :  { %s18_s16 = sshll.u32 %s189_s15, 4  ;;  %s26_s19 = sshll.u32 %s227_s1, 4  ;;  %s19_s16 = int_to_ptr.vmem [resolvable:$true] %s18_s16  ;;  %s27_s19 = int_to_ptr.hbm [resolvable:$true] %s26_s19 }
   0x4   :  { %21 = dma.hbm_to_vmem [thread:$0]  %s17_s14, 128, %s19_s16, [#allocation3]  }
   0x5   :  { %s190_s20 = smov [#allocation5]   ;;  %s191_s22 = smov 128  }
   0x6   :  { %s28_s21 = sshll.u32 %s190_s20, 4  ;;  %s192_s23 = smov 8   ;;  %s29_s21 = int_to_ptr.vmem [resolvable:$true] %s28_s21 }
   0x7   :  { %34 = dma.hbm_to_vmem [thread:$0]  %s27_s19, 2048, %s29_s21, [#allocation6], %s191_s22, %s191_s22, %s192_s23  }
   0x8   :  { %183 = dma.done.wait [#allocation3], 128  }
   0x9   :  { %184 = vsyncadd [#allocation3], 4294967168 }
   0xa   :  { %185 = dma.done.wait [#allocation6], 2048  }
   0xb   :  { %186 = vsyncadd [#allocation6], 4294965248  ;;  %v61_v0 = vld [vmem:[#allocation5 + $0x78] sm:$0xff]  ;;  %v60_v1 = vld [vmem:[#allocation5 + $0x70] sm:$0xff]  ;;  %s193_s24 = smov [#allocation7]   ;;  %s94_s28 = sshll.u32 %s229_s3, 4  ;;  %s95_s28 = int_to_ptr.hbm [resolvable:$true] %s94_s28 }
   0xc   :  { %66 = vmatpush.msra.mxu0 %v61_v0  ;;  %v59_v2 = vld [vmem:[#allocation5 + $0x68] sm:$0xff]  ;;  %v58_v3 = vld [vmem:[#allocation5 + $0x60] sm:$0xff]  ;;  %v57_v4 = vld [vmem:[#allocation5 + $0x58] sm:$0xff]  ;;  %s92_s25 = sshll.u32 %s193_s24, 4  ;;  %s93_s25 = int_to_ptr.vmem [resolvable:$true] %s92_s25 }
   0xd   :  { %v56_v5 = vld [vmem:[#allocation5 + $0x50] sm:$0xff]  ;;  %v55_v6 = vld [vmem:[#allocation5 + $0x48] sm:$0xff]  ;;  %v54_v7 = vld [vmem:[#allocation5 + $0x40] sm:$0xff] }
   0xe   :  { %67 = vmatpush.msra.mxu0 %v60_v1  ;;  %v53_v8 = vld [vmem:[#allocation5 + $0x38] sm:$0xff]  ;;  %v52_v9 = vld [vmem:[#allocation5 + $0x30] sm:$0xff]  ;;  %v51_v10 = vld [vmem:[#allocation5 + $0x28] sm:$0xff] }
   0xf   :  { %v50_v11 = vld [vmem:[#allocation5 + $0x20] sm:$0xff]  ;;  %v49_v12 = vld [vmem:[#allocation5 + $0x18] sm:$0xff]  ;;  %v48_v13 = vld [vmem:[#allocation5 + $0x10] sm:$0xff] }
  0x10   :  { %68 = vmatpush.msra.mxu0 %v59_v2  ;;  %v47_v14 = vld [vmem:[#allocation5 + $0x8] sm:$0xff]  ;;  %v46_v15 = vld [vmem:[#allocation5] sm:$0xff]  ;;  %v45_v16 = vld [vmem:[#allocation2] sm:$0xff] }
  0x11   :  { %v110_v17 = vld [vmem:[%s228_s2] ss:$0 sm:$0xff] }
  0x12   :  { %69 = vmatpush.msra.mxu0 %v58_v3 }
  0x14   :  { %70 = vmatpush.msra.mxu0 %v57_v4 }
  0x16   :  { %71 = vmatpush.msra.mxu0 %v56_v5 }
  0x18   :  { %72 = vmatpush.msra.mxu0 %v55_v6 }
  0x1a   :  { %73 = vmatpush.msra.mxu0 %v54_v7 }
  0x1c   :  { %74 = vmatpush.msra.mxu0 %v53_v8 }
  0x1e   :  { %75 = vmatpush.msra.mxu0 %v52_v9 }
  0x20   :  { %76 = vmatpush.msra.mxu0 %v51_v10 }
  0x22   :  { %77 = vmatpush.msra.mxu0 %v50_v11 }
  0x24   :  { %78 = vmatpush.msra.mxu0 %v49_v12 }
  0x26   :  { %79 = vmatpush.msra.mxu0 %v48_v13 }
  0x28   :  { %80 = vmatpush.msra.mxu0 %v47_v14 }
  0x2a   :  { %81 = vmatpush.msra.mxu0 %v46_v15 }
  0x2b   :  { %82 = vmatmul.f32.vlgmr.msra.gmra.mxu0 %v45_v16 }
  0xa8   :  { %v83_v18 = vpop.f32.mrf.mxu0 }
  0xa9   :  { %v84_v19 = vadd.f32 %v110_v17, %v83_v18 }
  0xab   :  { %86 = vst [vmem:[#allocation7] sm:$0xff] %v84_v19 }
  0xac   :  { %97 = dma.vmem_to_hbm [thread:$0]  %s93_s25, 128, %s95_s28, [#allocation4]  }
  0xad   :  { %187 = dma.done.wait [#allocation4], 128  }
  0xae   :  { %188 = vsyncadd [#allocation4], 4294967168 }
  0xaf   :  { %102 = vsyncpa [#allocation3], 1 }
  0xb0   :  { %103 = vsyncpa [#allocation6], 1 }
  0xb1   :  { %104 = vsyncpa [#allocation4], 1 }

</bundles_post_ra>
